<compile_context>
chip_gen: v7x
topology: tpu7x:2x2x1
jax: 0.10.0
libtpu: 0.0.40
codegen_flags: <defaults>
</compile_context>

<pallas_src>
import jax
import jax.numpy as jnp
from jax.experimental import pallas as pl
from jax.experimental.pallas import tpu as pltpu

F_IN = 41      # input features
H = 20         # hidden units
F_OUT = 7      # output classes
H_PAD = 128    # lane-aligned hidden width   (zero-padded)
OUT_PAD = 128  # lane-aligned output width   (zero-padded)

_PALLAS_MIN_BATCH = 2048  # below this, pure JAX is cheaper than a kernel launch


def _round_up(n, m):
    return ((n + m - 1) // m) * m


def mlp_kernel(x_ref, w1_ref, b1_ref, w2_ref, b2_ref, out_ref):
    """One batch tile: (TB, 41) @ (41, 128) -> ReLU -> @ (128, 128) -> (TB, 128)."""
    x = x_ref[...]                                                    # (TB, 41)
    h = jnp.dot(x, w1_ref[...], preferred_element_type=jnp.float32)   # (TB, 128)
    h = jnp.maximum(h + b1_ref[...], 0.0)                             # ReLU; pad cols stay 0
    o = jnp.dot(h, w2_ref[...], preferred_element_type=jnp.float32)   # (TB, 128)
    out_ref[...] = (o + b2_ref[...]).astype(out_ref.dtype)            # lane-dense store


def _pad_params(w1, b1, w2, b2):
    """Zero-pad params to (8,128)-friendly shapes. Zero padding is numerically exact."""
    w1p = jnp.zeros((F_IN, H_PAD), jnp.float32).at[:, :H].set(w1.astype(jnp.float32))
    b1p = jnp.zeros((1, H_PAD), jnp.float32).at[:, :H].set(b1.astype(jnp.float32))
    w2p = jnp.zeros((H_PAD, OUT_PAD), jnp.float32).at[:H, :F_OUT].set(w2.astype(jnp.float32))
    b2p = jnp.zeros((1, OUT_PAD), jnp.float32).at[:, :F_OUT].set(b2.astype(jnp.float32))
    return w1p, b1p, w2p, b2p


def food_network_forward_pallas(x, w1, b1, w2, b2, *, batch_tile=1024):
    """Pallas forward. x: (B, 41) f32; w1: (41, 20); b1: (20,); w2: (20, 7); b2: (7,)."""
    B = x.shape[0]
    assert x.shape[1] == F_IN

    w1p, b1p, w2p, b2p = _pad_params(w1, b1, w2, b2)

    # Batch tile: large enough to amortize per-step overhead, but never larger
    # than the (8-aligned) batch itself.  With OUT_PAD=128 lanes, TB<=4096 keeps
    # double-buffered in+out tiles well under v7x's scoped VMEM default.
    tb = min(batch_tile, _round_up(B, 8))
    tb = _round_up(tb, 8)
    b_pad = _round_up(B, tb)
    if b_pad != B:
        x = jnp.pad(x, ((0, b_pad - B), (0, 0)))
    x = x.astype(jnp.float32)
    # TODO(synk): optionally cast x/w to bf16 for ~2x HBM-read savings (keep f32 accum).

    grid = (pl.cdiv(b_pad, tb),)

    out_padded = pl.pallas_call(
        mlp_kernel,
        out_shape=jax.ShapeDtypeStruct((b_pad, OUT_PAD), jnp.float32),
        grid=grid,
        in_specs=[
            pl.BlockSpec((tb, F_IN), lambda i: (i, 0)),        # x tile, streamed
            pl.BlockSpec((F_IN, H_PAD), lambda i: (0, 0)),     # w1, resident
            pl.BlockSpec((1, H_PAD), lambda i: (0, 0)),        # b1, resident
            pl.BlockSpec((H_PAD, OUT_PAD), lambda i: (0, 0)),  # w2, resident
            pl.BlockSpec((1, OUT_PAD), lambda i: (0, 0)),      # b2, resident
        ],
        out_specs=pl.BlockSpec((tb, OUT_PAD), lambda i: (i, 0)),
        compiler_params=pltpu.CompilerParams(
            dimension_semantics=("parallel",),  # shard batch across TCs (v7x)
        ),
    )(x, w1p, b1p, w2p, b2p)

    return out_padded[:B, :F_OUT]


def food_network_forward_ref(x, w1, b1, w2, b2):
    """Pure-JAX reference of the same forward pass."""
    return jnp.maximum(x @ w1 + b1, 0.0) @ w2 + b2


def food_network_forward(x, w1, b1, w2, b2, *, batch_tile=1024):
    """Dispatch: tiny batches skip the Pallas launch entirely."""
    if x.shape[0] < _PALLAS_MIN_BATCH:
        return food_network_forward_ref(x, w1, b1, w2, b2)
    return food_network_forward_pallas(x, w1, b1, w2, b2, batch_tile=batch_tile)


def init_params(key):
    # Deterministic synthetic init matching nn.Linear's U(-1/sqrt(fan_in), ...)
    k1, k2, k3, k4 = jax.random.split(key, 4)
    lim1 = 1.0 / jnp.sqrt(float(F_IN))
    lim2 = 1.0 / jnp.sqrt(float(H))
    w1 = jax.random.uniform(k1, (F_IN, H), jnp.float32, -lim1, lim1)
    b1 = jax.random.uniform(k2, (H,), jnp.float32, -lim1, lim1)
    w2 = jax.random.uniform(k3, (H, F_OUT), jnp.float32, -lim2, lim2)
    b2 = jax.random.uniform(k4, (F_OUT,), jnp.float32, -lim2, lim2)
    return w1, b1, w2, b2


if __name__ == "__main__":
    key = jax.random.PRNGKey(0)
    kx, kx2, kp = jax.random.split(key, 3)
    w1, b1, w2, b2 = init_params(kp)

    # Test 1: small batch, single grid step (exercises the Pallas path directly).
    B = 8
    x = jax.random.normal(kx, (B, F_IN), jnp.float32)
    out = food_network_forward_pallas(x, w1, b1, w2, b2)
    out = jax.block_until_ready(out)
    ref = food_network_forward_ref(x, w1, b1, w2, b2)
    assert out.shape == (B, F_OUT)
    assert jnp.allclose(out, ref, atol=1e-5, rtol=1e-5)

    # Test 2: ragged batch with multiple grid steps (exercises batch padding + tiling).
    B2 = 37
    x2 = jax.random.normal(kx2, (B2, F_IN), jnp.float32)
    out2 = food_network_forward_pallas(x2, w1, b1, w2, b2, batch_tile=8)
    out2 = jax.block_until_ready(out2)
    ref2 = food_network_forward_ref(x2, w1, b1, w2, b2)
    assert out2.shape == (B2, F_OUT)
    assert jnp.allclose(out2, ref2, atol=1e-5, rtol=1e-5)

    print("KERNEL_OK")
</pallas_src>

<mosaic_0001>
module attributes {stable_mosaic.version = 11 : i64} {
  func.func @mlp_kernel(%arg0: i32, %arg1: memref<8x41xf32, #tpu.memory_space<vmem>>, %arg2: memref<41x128xf32, #tpu.memory_space<vmem>>, %arg3: memref<1x128xf32, #tpu.memory_space<vmem>>, %arg4: memref<128x128xf32, #tpu.memory_space<vmem>>, %arg5: memref<1x128xf32, #tpu.memory_space<vmem>>, %arg6: memref<8x128xf32, #tpu.memory_space<vmem>>) attributes {dimension_semantics = [#tpu.dimension_semantics<parallel>], iteration_bounds = array<i64: 1>, scalar_prefetch = 0 : i64, scratch_operands = 0 : i64, tpu.core_type = #tpu.core_type<tc>, window_params = [{transform_indices = @transform_0, window_bounds = array<i64: 8, 41>}, {pipeline_mode = #tpu.pipeline_mode<synchronous>, transform_indices = @transform_1, window_bounds = array<i64: 41, 128>}, {pipeline_mode = #tpu.pipeline_mode<synchronous>, transform_indices = @transform_2, window_bounds = array<i64: 1, 128>}, {pipeline_mode = #tpu.pipeline_mode<synchronous>, transform_indices = @transform_3, window_bounds = array<i64: 128, 128>}, {pipeline_mode = #tpu.pipeline_mode<synchronous>, transform_indices = @transform_4, window_bounds = array<i64: 1, 128>}, {transform_indices = @transform_5, window_bounds = array<i64: 8, 128>}]} {
    %c0 = arith.constant 0 : index
    %c0_0 = arith.constant 0 : index
    %0 = vector.load %arg1[%c0, %c0_0] : memref<8x41xf32, #tpu.memory_space<vmem>>, vector<8x41xf32>
    %c0_1 = arith.constant 0 : index
    %c0_2 = arith.constant 0 : index
    %1 = vector.load %arg2[%c0_1, %c0_2] : memref<41x128xf32, #tpu.memory_space<vmem>>, vector<41x128xf32>
    %cst = arith.constant dense<0.000000e+00> : vector<8x128xf32>
    %2 = tpu.matmul %0, %1, %cst {dimension_numbers = #tpu.dot_dimension_numbers<[1], [0], [0], [1], [0, 0, 1, 1], [], []>} : vector<8x41xf32>, vector<41x128xf32>, vector<8x128xf32> -> vector<8x128xf32>
    %c0_3 = arith.constant 0 : index
    %c0_4 = arith.constant 0 : index
    %3 = vector.load %arg3[%c0_3, %c0_4] : memref<1x128xf32, #tpu.memory_space<vmem>>, vector<1x128xf32>
    %4 = vector.broadcast %3 : vector<1x128xf32> to vector<8x128xf32>
    %5 = arith.addf %2, %4 : vector<8x128xf32>
    %cst_5 = arith.constant 0.000000e+00 : f32
    %6 = vector.broadcast %cst_5 : f32 to vector<8x128xf32>
    %7 = arith.maximumf %5, %6 : vector<8x128xf32>
    %c0_6 = arith.constant 0 : index
    %c0_7 = arith.constant 0 : index
    %8 = vector.load %arg4[%c0_6, %c0_7] : memref<128x128xf32, #tpu.memory_space<vmem>>, vector<128x128xf32>
    %cst_8 = arith.constant dense<0.000000e+00> : vector<8x128xf32>
    %9 = tpu.matmul %7, %8, %cst_8 {dimension_numbers = #tpu.dot_dimension_numbers<[1], [0], [0], [1], [0, 0, 1, 1], [], []>} : vector<8x128xf32>, vector<128x128xf32>, vector<8x128xf32> -> vector<8x128xf32>
    %c0_9 = arith.constant 0 : index
    %c0_10 = arith.constant 0 : index
    %10 = vector.load %arg5[%c0_9, %c0_10] : memref<1x128xf32, #tpu.memory_space<vmem>>, vector<1x128xf32>
    %11 = vector.broadcast %10 : vector<1x128xf32> to vector<8x128xf32>
    %12 = arith.addf %9, %11 : vector<8x128xf32>
    %c0_11 = arith.constant 0 : index
    %c0_12 = arith.constant 0 : index
    %13 = vector.load %arg6[%c0_11, %c0_12] : memref<8x128xf32, #tpu.memory_space<vmem>>, vector<8x128xf32>
    tpu.vector_store %arg6[%c0_11, %c0_12], %12 {strides = array<i32>} : memref<8x128xf32, #tpu.memory_space<vmem>>, vector<8x128xf32>,
    return
  }
  func.func @transform_0(%arg0: i32) -> (i32, i32) {
    %c0_i32 = arith.constant 0 : i32
    %c0_i32_0 = arith.constant 0 : i32
    return %arg0, %c0_i32 : i32, i32
  }
  func.func @transform_1(%arg0: i32) -> (i32, i32) {
    %c0_i32 = arith.constant 0 : i32
    %c0_i32_0 = arith.constant 0 : i32
    %c0_i32_1 = arith.constant 0 : i32
    return %c0_i32, %c0_i32_0 : i32, i32
  }
  func.func @transform_2(%arg0: i32) -> (i32, i32) {
    %c0_i32 = arith.constant 0 : i32
    %c0_i32_0 = arith.constant 0 : i32
    %c0_i32_1 = arith.constant 0 : i32
    return %c0_i32, %c0_i32_0 : i32, i32
  }
  func.func @transform_3(%arg0: i32) -> (i32, i32) {
    %c0_i32 = arith.constant 0 : i32
    %c0_i32_0 = arith.constant 0 : i32
    %c0_i32_1 = arith.constant 0 : i32
    return %c0_i32, %c0_i32_0 : i32, i32
  }
  func.func @transform_4(%arg0: i32) -> (i32, i32) {
    %c0_i32 = arith.constant 0 : i32
    %c0_i32_0 = arith.constant 0 : i32
    %c0_i32_1 = arith.constant 0 : i32
    return %c0_i32, %c0_i32_0 : i32, i32
  }
  func.func @transform_5(%arg0: i32) -> (i32, i32) {
    %c0_i32 = arith.constant 0 : i32
    %c0_i32_0 = arith.constant 0 : i32
    return %arg0, %c0_i32 : i32, i32
  }
}

</mosaic_0001>

<bundles_post_ra>
// kernel: tpu_custom_call.1
= control target key start
LH: loop header
LB: loop body
LE: loop exit
PB: predicated region body
PF: predicated region fallthrough
CT: control target
= control target key end

     0   :  { %10 = vsyncpa [#allocation3], 0  ;;  %s579_s0 = inlined_call_operand.hbm [shape: f32[8,41], index: 0, kind: input, shape index: {}]   ;;  %s580_s1 = inlined_call_operand.hbm [shape: f32[41,128], index: 1, kind: input, shape index: {}]   ;;  %s581_s2 = inlined_call_operand.vmem [shape: f32[1,128], index: 2, kind: input, shape index: {}]   ;;  %s582_s3 = inlined_call_operand.hbm [shape: f32[128,128], index: 3, kind: input, shape index: {}]   ;;  %s583_s4 = inlined_call_operand.vmem [shape: f32[1,128], index: 4, kind: input, shape index: {}]   ;;  %s584_s5 = inlined_call_operand.hbm [shape: f32[8,128], index: 5, kind: output, shape index: {}]  }
   0x1   :  { %11 = vsyncpa [#allocation6], 0 }
   0x2   :  { %12 = vsyncpa [#allocation4], 0  ;;  %s479_s18 = smov [#allocation5]   ;;  %s385_s22 = scalar_lea.hbm %s580_s1, 768 }
   0x3   :  { %s28_s19 = sshll.u32 %s479_s18, 4  ;;  %p386_p0 = scmp.ne.s32.totalorder %s580_s1, %s385_s22  ;;  %s29_s19 = int_to_ptr.vmem [resolvable:$true] %s28_s19 }
   0x4   :  { %p389_p1 = scmp.lt.u32.totalorder %s385_s22, %s580_s1 }
   0x6   :  { %p391_p2 = pnand %p389_p1, %p386_p0 }
   0x8   :  { %394 = shalt.err (!%p391_p2)
}
   0x9   :  { %s395_s27 = scalar_lea.vmem %s29_s19, 768  ;;  %p400_p4 = scmp.lt.s32.totalorder %s29_s19, %s29_s19 }
   0xa   :  { %p396_p3 = scmp.ne.s32.totalorder %s29_s19, %s395_s27  ;;  %p401_p5 = scmp.lt.s32.totalorder %s395_s27, %s395_s27 }
   0xc   :  { %p402_p6 = por %p401_p5, %p400_p4 }
   0xe   :  { %p403_p7 = pnand %p402_p6, %p396_p3 }
  0x10   :  { %406 = shalt.err (!%p403_p7)
}
  0x11   :  { %s480_s28 = smov 128   ;;  %s481_s29 = smov 8  }
  0x12   :  { %34 = dma.hbm_to_vmem [thread:$0]  %s580_s1, 768, %s29_s19, [#allocation6], %s480_s28, %s480_s28, %s481_s29  }
  0x13   :  { %s482_s7 = smov [#allocation2]   ;;  %s483_s9 = smov [#allocation7]  }
  0x14   :  { %s19_s8 = sshll.u32 %s482_s7, 4  ;;  %s42_s10 = sshll.u32 %s483_s9, 4  ;;  %s20_s8 = int_to_ptr.vmem [resolvable:$true] %s19_s8  ;;  %s43_s10 = int_to_ptr.vmem [resolvable:$true] %s42_s10 }
  0x15   :  { %s407_s13 = scalar_lea.hbm %s579_s0, 128 }
  0x16   :  { %p408_p8 = scmp.ne.s32.totalorder %s579_s0, %s407_s13  ;;  %p411_p9 = scmp.lt.u32.totalorder %s407_s13, %s579_s0 }
  0x18   :  { %p413_p10 = pnand %p411_p9, %p408_p8 }
  0x1a   :  { %416 = shalt.err (!%p413_p10)
}
  0x1b   :  { %s417_s1 = scalar_lea.vmem %s20_s8, 128  ;;  %p422_p12 = scmp.lt.s32.totalorder %s20_s8, %s20_s8 }
  0x1c   :  { %p418_p11 = scmp.ne.s32.totalorder %s20_s8, %s417_s1  ;;  %p423_p13 = scmp.lt.s32.totalorder %s417_s1, %s417_s1 }
  0x1e   :  { %p424_p0 = por %p423_p13, %p422_p12 }
  0x20   :  { %p425_p1 = pnand %p424_p0, %p418_p11 }
  0x22   :  { %428 = shalt.err (!%p425_p1)
}
  0x23   :  { %22 = dma.hbm_to_vmem [thread:$0]  %s579_s0, 128, %s20_s8, [#allocation3]  }
  0x24   :  { %s429_s22 = scalar_lea.hbm %s582_s3, 2048 }
  0x25   :  { %p430_p2 = scmp.ne.s32.totalorder %s582_s3, %s429_s22  ;;  %p433_p3 = scmp.lt.u32.totalorder %s429_s22, %s582_s3 }
  0x27   :  { %p435_p4 = pnand %p433_p3, %p430_p2 }
  0x29   :  { %438 = shalt.err (!%p435_p4)
}
  0x2a   :  { %s439_s27 = scalar_lea.vmem %s43_s10, 2048  ;;  %p444_p6 = scmp.lt.s32.totalorder %s43_s10, %s43_s10 }
  0x2b   :  { %p440_p5 = scmp.ne.s32.totalorder %s43_s10, %s439_s27  ;;  %p445_p7 = scmp.lt.s32.totalorder %s439_s27, %s439_s27 }
  0x2d   :  { %p446_p8 = por %p445_p7, %p444_p6 }
  0x2f   :  { %p447_p9 = pnand %p446_p8, %p440_p5 }
  0x31   :  { %450 = shalt.err (!%p447_p9)
}
  0x32   :  { %48 = dma.hbm_to_vmem [thread:$0]  %s582_s3, 2048, %s43_s10, [#allocation6], %s480_s28, %s480_s28, %s481_s29  }
  0x33   :  { %473 = dma.done.wait [#allocation3], 128  }
  0x34   :  { %474 = vsyncadd [#allocation3], 4294967168 }
  0x35   :  { %475 = dma.done.wait [#allocation6], 2816  }
  0x36   :  { %476 = vsyncadd [#allocation6], 4294964480  ;;  %v484_v0 = vmov 0.0|0.0   ;;  %vm485_vm0 = vmmov 0   ;;  %v486_v1 = vmov 0.0   ;;  %v61_v2 = vld [vmem:[#allocation5] sm:$0xff] }
  0x37   :  { %341 = vmatprep.subr.bf16.mxu0 %v484_v0  ;;  %351 = vmatprep.subr.bf16.mxu1 %v484_v0  ;;  %v62_v3 = vld [vmem:[#allocation5 + $0x8] sm:$0xff]  ;;  %v63_v4 = vld [vmem:[#allocation5 + $0x10] sm:$0xff]  ;;  %v64_v6 = vld [vmem:[#allocation5 + $0x18] sm:$0xff]  ;;  %vm78_vm1 = vcmask 1040384   ;;  %vm487_vm2 = vmmov 1   ;;  %vm74_vm4 = vcmask 334848  }
  0x38   :  { %303 = vmatprep.mubr.msk.f32.mxu0 %vm485_vm0, %v486_v1  ;;  %338 = vmatprep.mubr.msk.f32.mxu1 %vm485_vm0, %v486_v1  ;;  %v342_v5 = vpack.c.bf16 %v62_v3, %v61_v2  ;;  %v153_v7 = vld [vmem:[#allocation7] sm:$0xff]  ;;  %v154_v8 = vld [vmem:[#allocation7 + $0x8] sm:$0xff]  ;;  %v345_v9 = vpack.c.bf16 %v64_v6, %v63_v4  ;;  %v155_v11 = vld [vmem:[#allocation7 + $0x10] sm:$0xff]  ;;  %s488_s7 = smov [#allocation8]  }
  0x39   :  { %v352_v10 = vpack.c.bf16 %v154_v8, %v153_v7  ;;  %v156_v12 = vld [vmem:[#allocation7 + $0x18] sm:$0xff]  ;;  %v65_v13 = vld [vmem:[#allocation5 + $0x20] sm:$0xff]  ;;  %v157_v16 = vld [vmem:[#allocation7 + $0x20] sm:$0xff]  ;;  %s253_s8 = sshll.u32 %s488_s7, 4  ;;  %s254_s8 = int_to_ptr.vmem [resolvable:$true] %s253_s8 }
  0x3a   :  { %343 = vmatpush3.bf16.msra.mxu0 %v342_v5  ;;  %v66_v14 = vld [vmem:[#allocation5 + $0x28] sm:$0x1]  ;;  %v355_v15 = vpack.c.bf16 %v156_v12, %v155_v11  ;;  %v158_v17 = vld [vmem:[#allocation7 + $0x28] sm:$0xff]  ;;  %vm349_vm3 = vmpackc.low %vm78_vm1, %vm487_vm2  ;;  %s451_s9 = scalar_lea.vmem %s254_s8, 128  ;;  %p456_p11 = scmp.lt.s32.totalorder %s254_s8, %s254_s8 }
  0x3b   :  { %344 = vmatprep.subr.bf16.mxu0 %v484_v0  ;;  %353 = vmatpush3.bf16.msra.mxu1 %v352_v10  ;;  %v348_v18 = vpack.c.bf16 %v66_v14, %v65_v13  ;;  %v358_v19 = vpack.c.bf16 %v158_v17, %v157_v16  ;;  %v159_v20 = vld [vmem:[#allocation7 + $0x30] sm:$0xff]  ;;  %v160_v21 = vld [vmem:[#allocation7 + $0x38] sm:$0xff]  ;;  %v60_v22 = vld [vmem:[#allocation2] sm:$0xff]  ;;  %p452_p10 = scmp.ne.s32.totalorder %s254_s8, %s451_s9  ;;  %p457_p12 = scmp.lt.s32.totalorder %s451_s9, %s451_s9 }
  0x3c   :  { %354 = vmatprep.subr.bf16.mxu1 %v484_v0  ;;  %v361_v23 = vpack.c.bf16 %v160_v21, %v159_v20  ;;  %v161_v24 = vld [vmem:[#allocation7 + $0x40] sm:$0xff]  ;;  %v162_v25 = vld [vmem:[#allocation7 + $0x48] sm:$0xff]  ;;  %v163_v27 = vld [vmem:[#allocation7 + $0x50] sm:$0xff] }
  0x3d   :  { %v364_v26 = vpack.c.bf16 %v162_v25, %v161_v24  ;;  %v164_v28 = vld [vmem:[#allocation7 + $0x58] sm:$0xff]  ;;  %v165_v30 = vld [vmem:[#allocation7 + $0x60] sm:$0xff]  ;;  %v166_v31 = vld [vmem:[#allocation7 + $0x68] sm:$0xff]  ;;  %p458_p13 = por %p457_p12, %p456_p11 }
  0x3e   :  { %346 = vmatpush3.bf16.msra.mxu0 %v345_v9  ;;  %v367_v29 = vpack.c.bf16 %v164_v28, %v163_v27  ;;  %v370_v32 = vpack.c.bf16 %v166_v31, %v165_v30  ;;  %v167_v33 = vld [vmem:[#allocation7 + $0x70] sm:$0xff]  ;;  %v168_v34 = vld [vmem:[#allocation7 + $0x78] sm:$0xff]  ;;  %v263_v36 = vld [vmem:[%s581_s2] ss:$0 sm:$0xff] }
  0x3f   :  { %347 = vmatprep.subr.bf16.mxu0 %v484_v0  ;;  %356 = vmatpush3.bf16.msra.mxu1 %v355_v15  ;;  %v373_v35 = vpack.c.bf16 %v168_v34, %v167_v33  ;;  %v266_v41 = vld [vmem:[%s583_s4] ss:$0 sm:$0xff]  ;;  %p459_p0 = pnand %p458_p13, %p452_p10 }
  0x40   :  { %357 = vmatprep.subr.bf16.mxu1 %v484_v0 }
  0x42   :  { %350 = vmatpush3.bf16.msk.msra.mxu0 %vm349_vm3, %v348_v18 }
  0x43   :  { %359 = vmatpush3.bf16.msra.mxu1 %v358_v19 }
  0x44   :  { %360 = vmatprep.subr.bf16.mxu1 %v484_v0 }
  0x45   :  { %304 = vmatmul.mubr.msk.f32.vlgmr.msra.gmra.mrb[0].mxu0 %vm74_vm4, %v60_v22 }
  0x47   :  { %362 = vmatpush3.bf16.msra.mxu1 %v361_v23 }
  0x48   :  { %363 = vmatprep.subr.bf16.mxu1 %v484_v0 }
  0x4b   :  { %365 = vmatpush3.bf16.msra.mxu1 %v364_v26 }
  0x4c   :  { %366 = vmatprep.subr.bf16.mxu1 %v484_v0 }
  0x4f   :  { %368 = vmatpush3.bf16.msra.mxu1 %v367_v29 }
  0x50   :  { %369 = vmatprep.subr.bf16.mxu1 %v484_v0 }
  0x53   :  { %371 = vmatpush3.bf16.msra.mxu1 %v370_v32 }
  0x54   :  { %372 = vmatprep.subr.bf16.mxu1 %v484_v0 }
  0x57   :  { %374 = vmatpush3.bf16.msra.mxu1 %v373_v35 }
 0x118   :  { %v148_v37 = vpop.f32.mrb[0].mxu0 }
 0x119   :  { %v149_v38 = vadd.f32 %v263_v36, %v148_v37  ;;  %v305_v39 = vpop.f32.mrb[1].mxu0 }
 0x11b   :  { %v152_v40 = vmax.f32 %v149_v38, 0.0 }
 0x11d   :  { %339 = vmatmul.mubr.f32.vlgmr.msra.gmra.mrb[0].mxu1 %v152_v40 }
 0x1f0   :  { %v242_v42 = vpop.f32.mrb[0].mxu1 }
 0x1f1   :  { %v243_v43 = vadd.f32 %v266_v41, %v242_v42  ;;  %v340_v44 = vpop.f32.mrb[1].mxu1 }
 0x1f3   :  { %246 = vst [vmem:[#allocation8] sm:$0xff] %v243_v43 }
 0x1f4   :  { %462 = shalt.err (!%p459_p0)
}
 0x1f5   :  { %s463_s11 = scalar_lea.hbm %s584_s5, 128 }
 0x1f6   :  { %p464_p1 = scmp.ne.s32.totalorder %s584_s5, %s463_s11  ;;  %p467_p2 = scmp.lt.u32.totalorder %s463_s11, %s584_s5 }
 0x1f8   :  { %p469_p3 = pnand %p467_p2, %p464_p1 }
 0x1fa   :  { %472 = shalt.err (!%p469_p3)
}
 0x1fb   :  { %256 = dma.vmem_to_hbm [thread:$0]  %s254_s8, 128, %s584_s5, [#allocation4]  }
 0x1fc   :  { %477 = dma.done.wait [#allocation4], 128  }
 0x1fd   :  { %478 = vsyncadd [#allocation4], 4294967168 }
 0x1fe   :  { %260 = vsyncpa [#allocation3], 1 }
 0x1ff   :  { %261 = vsyncpa [#allocation6], 1 }
 0x200   :  { %262 = vsyncpa [#allocation4], 1 }

</bundles_post_ra>
